<compile_context>
chip_gen: v6e
topology: v6e:2x2x1
jax: 0.10.0
libtpu: 0.0.40
codegen_flags: <defaults>
</compile_context>

<pallas_src>
import functools

import jax
import jax.numpy as jnp
from jax.experimental import pallas as pl
from jax.experimental.pallas import tpu as pltpu

BN_EPS = 1e-5


def _round_up(x, m):
    return ((x + m - 1) // m) * m


def _vmem_capacity_bytes():
    try:
        return int(pltpu.get_tpu_info().vmem_capacity_bytes)
    except Exception:
        return 64 * 1024 * 1024  # conservative: v7x per-TC VMEM


def _num_tensorcores():
    # Megacore heuristic: v7x has 2 TensorCores per chip; v5e/v6e have 1.
    try:
        if "v7" in jax.devices()[0].device_kind.lower():
            return 2
    except Exception:
        pass
    return 1


# ---------------------------------------------------------------------------
# Single-pass fused kernel (whole batch resident per feature tile).
# ---------------------------------------------------------------------------
def _fused_kernel(x_ref, w_ref, gamma_ref, beta_ref, o_ref, *, inv_n):
    k = pl.program_id(1)
    nk = pl.num_programs(1)

    @pl.when(k == 0)
    def _():
        o_ref[...] = jnp.zeros_like(o_ref)

    # bf16 @ bf16 -> f32, accumulated directly into the resident output block
    # (its block index is constant across the K axis, so no extra scratch).
    o_ref[...] += jnp.dot(x_ref[...], w_ref[...],
                          preferred_element_type=jnp.float32)

    @pl.when(k == nk - 1)
    def _():
        y = o_ref[...]                                     # (N, TF) f32
        mean = jnp.sum(y, axis=0, keepdims=True) * inv_n   # (1, TF)
        d = y - mean
        var = jnp.sum(d * d, axis=0, keepdims=True) * inv_n  # centered variance
        scale = gamma_ref[...] * jax.lax.rsqrt(var + BN_EPS)
        o_ref[...] = jnp.maximum(d * scale + beta_ref[...], 0.0).astype(o_ref.dtype)


def _single_pass_bytes(n, tk, tf):
    x_b = 2 * n * tk * 2      # bf16 x, double-buffered
    w_b = 3 * tk * tf * 2     # bf16 W, up to triple-buffered
    o_b = n * tf * 4          # f32 output block, resident across K
    epi = n * tf * 4          # epilogue temporaries (y - mean), headroom
    par = 4 * tf * 4          # gamma / beta blocks (tiny)
    return x_b + w_b + o_b + epi + par


def _dense_norm_relu_single_pass(x16, w16, g2, b2, n, k_dim, f_pad,
                                 vmem_cap, budget):
    min_tk = k_dim if (k_dim % 128 != 0) else 128

    # Feature tile: largest candidate that divides f_pad and fits the budget.
    tf = 128
    for c in (1024, 512, 256, 128):
        if f_pad % c == 0 and _single_pass_bytes(n, min_tk, c) <= budget:
            tf = c
            break

    # v7x megacore: make sure the "parallel" feature axis has >= 2 tiles.
    if (_num_tensorcores() > 1 and f_pad // tf == 1 and tf >= 256
            and f_pad % (tf // 2) == 0):
        tf //= 2

    # K tile: small batches prefer few / fat K steps (keeps MXU steps fatter
    # and minimizes per-step overhead).
    tk = None
    if (n < 256 or k_dim % 128 != 0) and _single_pass_bytes(n, k_dim, tf) <= budget:
        tk = k_dim
    if tk is None:
        for c in (1024, 512, 256, 128):
            if k_dim % c == 0 and _single_pass_bytes(n, c, tf) <= budget:
                tk = c
                break
    if tk is None:
        tk = min_tk

    nkt = k_dim // tk
    w_kwargs = {}
    if n < 256 and nkt >= 3:
        # Short per-step matmul + long K grid: deepen W buffering to hide DMA.
        w_kwargs["pipeline_mode"] = pl.Buffered(3)

    vmem_limit = int(min(vmem_cap,
                         max(32 << 20, _single_pass_bytes(n, tk, tf) + (16 << 20))))

    kernel = functools.partial(_fused_kernel, inv_n=1.0 / n)
    return pl.pallas_call(
        kernel,
        out_shape=jax.ShapeDtypeStruct((n, f_pad), jnp.float32),
        grid_spec=pltpu.PrefetchScalarGridSpec(
            num_scalar_prefetch=0,
            grid=(f_pad // tf, nkt),
            in_specs=[
                pl.BlockSpec((n, tk), lambda j, k: (0, k)),               # x (bf16)
                pl.BlockSpec((tk, tf), lambda j, k: (k, j), **w_kwargs),  # W (bf16)
                pl.BlockSpec((1, tf), lambda j, k: (0, j)),               # gamma
                pl.BlockSpec((1, tf), lambda j, k: (0, j)),               # beta
            ],
            out_specs=pl.BlockSpec((n, tf), lambda j, k: (0, j)),
        ),
        compiler_params=pltpu.CompilerParams(
            dimension_semantics=("parallel", "arbitrary"),
            vmem_limit_bytes=vmem_limit,
        ),
    )(x16, w16, g2, b2)


# ---------------------------------------------------------------------------
# Two-pass path for large batches (N tiled; no whole-batch residency).
# ---------------------------------------------------------------------------
def _pass1_kernel(x_ref, w_ref, y_ref, s_ref, ss_ref):
    i = pl.program_id(1)
    k = pl.program_id(2)
    nk = pl.num_programs(2)

    @pl.when((i == 0) & (k == 0))
    def _():
        s_ref[...] = jnp.zeros_like(s_ref)
        ss_ref[...] = jnp.zeros_like(ss_ref)

    @pl.when(k == 0)
    def _():
        y_ref[...] = jnp.zeros_like(y_ref)

    y_ref[...] += jnp.dot(x_ref[...], w_ref[...],
                          preferred_element_type=jnp.float32)

    @pl.when(k == nk - 1)
    def _():
        y = y_ref[...]
        s_ref[...] += jnp.sum(y, axis=0, keepdims=True)
        ss_ref[...] += jnp.sum(y * y, axis=0, keepdims=True)


def _pass2_kernel(y_ref, s_ref, ss_ref, gamma_ref, beta_ref, o_ref, *, inv_n):
    mean = s_ref[...] * inv_n
    var = jnp.maximum(ss_ref[...] * inv_n - mean * mean, 0.0)
    scale = gamma_ref[...] * jax.lax.rsqrt(var + BN_EPS)
    shift = beta_ref[...] - scale * mean
    o_ref[...] = jnp.maximum(y_ref[...] * scale + shift, 0.0).astype(o_ref.dtype)


def _pass1_bytes(ti, tk, tf):
    return (2 * ti * tk * 2 + 2 * tk * tf * 2 + ti * tf * 4
            + 4 * tf * 4 + (1 << 20))


def _dense_norm_relu_two_pass(x16, w16, g2, b2, n, k_dim, f_pad,
                              vmem_cap, budget):
    # N tile: largest candidate dividing n.  The batch cannot be zero-padded
    # (that would change the batch statistics).
    ti = None
    for c in (1024, 512, 256, 128, 64, 32, 16, 8):
        if n % c == 0:
            ti = c
            break
    if ti is None:
        raise ValueError("two-pass path requires batch size to be a multiple of 8")

    min_tk = k_dim if (k_dim % 128 != 0) else 128
    tf = 128
    for c in (512, 256, 128):
        if f_pad % c == 0 and _pass1_bytes(ti, min_tk, c) <= budget:
            tf = c
            break
    if (_num_tensorcores() > 1 and f_pad // tf == 1 and tf >= 256
            and f_pad % (tf // 2) == 0):
        tf //= 2

    if k_dim % 128 != 0:
        tk = k_dim
    else:
        tk = 128
        for c in (512, 256, 128):
            if k_dim % c == 0 and _pass1_bytes(ti, c, tf) <= budget:
                tk = c
                break

    vmem_limit1 = int(min(vmem_cap,
                          max(32 << 20, _pass1_bytes(ti, tk, tf) + (16 << 20))))

    # Pass 1: y = x @ W plus per-feature sum / sum-of-squares accumulated
    # across N tiles (stats block index is constant over the i and k axes).
    y, s, ss = pl.pallas_call(
        _pass1_kernel,
        out_shape=(
            jax.ShapeDtypeStruct((n, f_pad), jnp.float32),
            jax.ShapeDtypeStruct((1, f_pad), jnp.float32),
            jax.ShapeDtypeStruct((1, f_pad), jnp.float32),
        ),
        grid_spec=pltpu.PrefetchScalarGridSpec(
            num_scalar_prefetch=0,
            grid=(f_pad // tf, n // ti, k_dim // tk),
            in_specs=[
                pl.BlockSpec((ti, tk), lambda j, i, k: (i, k)),   # x (bf16)
                pl.BlockSpec((tk, tf), lambda j, i, k: (k, j)),   # W (bf16)
            ],
            out_specs=[
                pl.BlockSpec((ti, tf), lambda j, i, k: (i, j)),   # y
                pl.BlockSpec((1, tf), lambda j, i, k: (0, j)),    # sum
                pl.BlockSpec((1, tf), lambda j, i, k: (0, j)),    # sum of squares
            ],
        ),
        compiler_params=pltpu.CompilerParams(
            dimension_semantics=("parallel", "arbitrary", "arbitrary"),
            vmem_limit_bytes=vmem_limit1,
        ),
    )(x16, w16)

    # Pass 2: stream y over N tiles and apply the folded BN affine + ReLU.
    vmem_limit2 = int(min(vmem_cap, max(32 << 20, 4 * ti * tf * 4 + (8 << 20))))
    return pl.pallas_call(
        functools.partial(_pass2_kernel, inv_n=1.0 / n),
        out_shape=jax.ShapeDtypeStruct((n, f_pad), jnp.float32),
        grid_spec=pltpu.PrefetchScalarGridSpec(
            num_scalar_prefetch=0,
            grid=(f_pad // tf, n // ti),
            in_specs=[
                pl.BlockSpec((ti, tf), lambda j, i: (i, j)),   # y
                pl.BlockSpec((1, tf), lambda j, i: (0, j)),    # sum
                pl.BlockSpec((1, tf), lambda j, i: (0, j)),    # sum of squares
                pl.BlockSpec((1, tf), lambda j, i: (0, j)),    # gamma
                pl.BlockSpec((1, tf), lambda j, i: (0, j)),    # beta
            ],
            out_specs=pl.BlockSpec((ti, tf), lambda j, i: (i, j)),
        ),
        compiler_params=pltpu.CompilerParams(
            dimension_semantics=("parallel", "parallel"),
            vmem_limit_bytes=vmem_limit2,
        ),
    )(y, s, ss, g2, b2)


# ---------------------------------------------------------------------------
# Public wrapper.
# ---------------------------------------------------------------------------
def dense_norm_relu(x, w, b, gamma, beta, *, force_two_pass=False):
    """x: (N, in_feats) f32, w: (in_feats, out_feats), b/gamma/beta: (out_feats,).

    Matches the train-mode forward of nn.Linear -> nn.BatchNorm1d -> ReLU.
    `b` is accepted for module fidelity but unused: a per-feature constant
    added before training-mode batch normalization cancels exactly in (y - mean).
    """
    del b
    n, k_dim = x.shape
    f = w.shape[1]

    # Pad the feature axis to a multiple of 128 for lane-dense output stores.
    f_pad = _round_up(f, 128)
    if f_pad != f:
        pad = f_pad - f
        w = jnp.pad(w, ((0, 0), (0, pad)))
        gamma = jnp.pad(gamma, (0, pad), constant_values=1.0)
        beta = jnp.pad(beta, (0, pad))
    g2 = gamma.reshape(1, f_pad).astype(jnp.float32)
    be2 = beta.reshape(1, f_pad).astype(jnp.float32)

    # bf16 inputs: native-rate MXU matmul, half the HBM/VMEM traffic for x/W.
    # Accumulation is f32 (preferred_element_type); BN/ReLU run in f32.
    x16 = x.astype(jnp.bfloat16)
    w16 = w.astype(jnp.bfloat16)

    vmem_cap = _vmem_capacity_bytes()
    budget = int(vmem_cap * 0.7)

    min_tk = k_dim if (k_dim % 128 != 0) else 128
    fits_single = _single_pass_bytes(n, min_tk, 128) <= budget

    # TODO(synk): ragged batches (n % 8 != 0) that also exceed VMEM would need
    # a masked two-pass path; such batches fall back to the single-pass kernel.
    if (fits_single and not force_two_pass) or (n % 8 != 0):
        out = _dense_norm_relu_single_pass(x16, w16, g2, be2, n, k_dim, f_pad,
                                           vmem_cap, budget)
    else:
        out = _dense_norm_relu_two_pass(x16, w16, g2, be2, n, k_dim, f_pad,
                                        vmem_cap, budget)

    if f_pad != f:
        out = out[:, :f]
    return out.astype(x.dtype)


def reference(x, w, b, gamma, beta):
    # Full PyTorch-equivalent forward (bias included; it cancels in BN).
    y = x @ w + b[None, :]
    mean = jnp.mean(y, axis=0, keepdims=True)
    var = jnp.mean((y - mean) ** 2, axis=0, keepdims=True)   # biased variance
    y = (y - mean) / jnp.sqrt(var + BN_EPS)
    y = gamma[None, :] * y + beta[None, :]
    return jnp.maximum(y, 0.0)


if __name__ == "__main__":
    key = jax.random.PRNGKey(0)

    # Case 1: small shapes -> single-pass fused kernel.
    N, IN_FEATS, OUT_FEATS = 8, 32, 64
    k1, k2, k3, k4 = jax.random.split(key, 4)
    x = jax.random.normal(k1, (N, IN_FEATS), dtype=jnp.float32)
    bound = 1.0 / (IN_FEATS ** 0.5)
    w = jax.random.uniform(k2, (IN_FEATS, OUT_FEATS), jnp.float32, -bound, bound)
    b = jax.random.uniform(k3, (OUT_FEATS,), jnp.float32, -bound, bound)
    gamma = jnp.ones((OUT_FEATS,), jnp.float32)   # BatchNorm1d default weight
    beta = jnp.zeros((OUT_FEATS,), jnp.float32)   # BatchNorm1d default bias

    out = jax.block_until_ready(dense_norm_relu(x, w, b, gamma, beta))
    ref = reference(x, w, b, gamma, beta)
    assert out.shape == (N, OUT_FEATS)
    assert jnp.allclose(out, ref, atol=3e-2, rtol=3e-2), \
        float(jnp.max(jnp.abs(out - ref)))

    # Case 2: exercise the N-tiled two-pass path and feature padding (192->256).
    N2, IN2, OUT2 = 2048, 384, 192
    j1, j2, j3 = jax.random.split(k4, 3)
    x2 = jax.random.normal(j1, (N2, IN2), dtype=jnp.float32)
    bound2 = 1.0 / (IN2 ** 0.5)
    w2 = jax.random.uniform(j2, (IN2, OUT2), jnp.float32, -bound2, bound2)
    b2 = jax.random.uniform(j3, (OUT2,), jnp.float32, -bound2, bound2)
    gamma2 = jnp.ones((OUT2,), jnp.float32)
    beta2 = jnp.zeros((OUT2,), jnp.float32)

    out2 = jax.block_until_ready(
        dense_norm_relu(x2, w2, b2, gamma2, beta2, force_two_pass=True))
    ref2 = reference(x2, w2, b2, gamma2, beta2)
    assert out2.shape == (N2, OUT2)
    assert jnp.allclose(out2, ref2, atol=3e-2, rtol=3e-2), \
        float(jnp.max(jnp.abs(out2 - ref2)))

    print("KERNEL_OK")
</pallas_src>

<mosaic_0001>
module attributes {stable_mosaic.version = 11 : i64} {
  func.func @_fused_kernel(%arg0: i32, %arg1: i32, %arg2: memref<8x32xbf16, #tpu.memory_space<vmem>>, %arg3: memref<32x128xbf16, #tpu.memory_space<vmem>>, %arg4: memref<1x128xf32, #tpu.memory_space<vmem>>, %arg5: memref<1x128xf32, #tpu.memory_space<vmem>>, %arg6: memref<8x128xf32, #tpu.memory_space<vmem>>) attributes {dimension_semantics = [#tpu.dimension_semantics<parallel>, #tpu.dimension_semantics<arbitrary>], iteration_bounds = array<i64: 1, 1>, scalar_prefetch = 0 : i64, scratch_operands = 0 : i64, tpu.core_type = #tpu.core_type<tc>, window_params = [{transform_indices = @transform_0, window_bounds = array<i64: 8, 32>}, {transform_indices = @transform_1, window_bounds = array<i64: 32, 128>}, {transform_indices = @transform_2, window_bounds = array<i64: 1, 128>}, {transform_indices = @transform_3, window_bounds = array<i64: 1, 128>}, {transform_indices = @transform_4, window_bounds = array<i64: 8, 128>}]} {
    %c0_i32 = arith.constant 0 : i32
    %0 = arith.cmpi eq, %arg1, %c0_i32 : i32
    %1 = arith.extui %0 : i1 to i32
    %c0_i32_0 = arith.constant 0 : i32
    %2 = arith.cmpi ne, %1, %c0_i32_0 : i32
    scf.if %2 {
      %cst_10 = arith.constant 0.000000e+00 : f32
      %12 = vector.broadcast %cst_10 : f32 to vector<8x128xf32>
      %c0_11 = arith.constant 0 : index
      %c0_12 = arith.constant 0 : index
      %13 = vector.load %arg6[%c0_11, %c0_12] : memref<8x128xf32, #tpu.memory_space<vmem>>, vector<8x128xf32>
      tpu.vector_store %arg6[%c0_11, %c0_12], %12 {strides = array<i32>} : memref<8x128xf32, #tpu.memory_space<vmem>>, vector<8x128xf32>,
    } else {
    }
    %c0 = arith.constant 0 : index
    %c0_1 = arith.constant 0 : index
    %3 = vector.load %arg6[%c0, %c0_1] : memref<8x128xf32, #tpu.memory_space<vmem>>, vector<8x128xf32>
    %c0_2 = arith.constant 0 : index
    %c0_3 = arith.constant 0 : index
    %4 = vector.load %arg2[%c0_2, %c0_3] : memref<8x32xbf16, #tpu.memory_space<vmem>>, vector<8x32xbf16>
    %c0_4 = arith.constant 0 : index
    %c0_5 = arith.constant 0 : index
    %5 = vector.load %arg3[%c0_4, %c0_5] : memref<32x128xbf16, #tpu.memory_space<vmem>>, vector<32x128xbf16>
    %cst = arith.constant dense<0.000000e+00> : vector<8x128xf32>
    %6 = tpu.matmul %4, %5, %cst {dimension_numbers = #tpu.dot_dimension_numbers<[1], [0], [0], [1], [0, 0, 1, 1], [], []>} : vector<8x32xbf16>, vector<32x128xbf16>, vector<8x128xf32> -> vector<8x128xf32>
    %7 = arith.addf %3, %6 : vector<8x128xf32>
    %c0_6 = arith.constant 0 : index
    %c0_7 = arith.constant 0 : index
    %8 = vector.load %arg6[%c0_6, %c0_7] : memref<8x128xf32, #tpu.memory_space<vmem>>, vector<8x128xf32>
    tpu.vector_store %arg6[%c0_6, %c0_7], %7 {strides = array<i32>} : memref<8x128xf32, #tpu.memory_space<vmem>>, vector<8x128xf32>,
    %c0_i32_8 = arith.constant 0 : i32
    %9 = arith.cmpi eq, %arg1, %c0_i32_8 : i32
    %10 = arith.extui %9 : i1 to i32
    %c0_i32_9 = arith.constant 0 : i32
    %11 = arith.cmpi ne, %10, %c0_i32_9 : i32
    scf.if %11 {
      %c0_10 = arith.constant 0 : index
      %c0_11 = arith.constant 0 : index
      %12 = vector.load %arg6[%c0_10, %c0_11] : memref<8x128xf32, #tpu.memory_space<vmem>>, vector<8x128xf32>
      %cst_12 = arith.constant dense<0.000000e+00> : vector<128xf32>
      %13 = vector.multi_reduction <add>, %12, %cst_12 [0] : vector<8x128xf32> to vector<128xf32>
      %14 = vector.shape_cast %13 : vector<128xf32> to vector<1x128xf32>
      %cst_13 = arith.constant 1.250000e-01 : f32
      %15 = vector.broadcast %cst_13 : f32 to vector<1x128xf32>
      %16 = arith.mulf %14, %15 : vector<1x128xf32>
      %17 = vector.broadcast %16 : vector<1x128xf32> to vector<8x128xf32>
      %18 = arith.subf %12, %17 : vector<8x128xf32>
      %19 = arith.mulf %18, %18 : vector<8x128xf32>
      %cst_14 = arith.constant dense<0.000000e+00> : vector<128xf32>
      %20 = vector.multi_reduction <add>, %19, %cst_14 [0] : vector<8x128xf32> to vector<128xf32>
      %21 = vector.shape_cast %20 : vector<128xf32> to vector<1x128xf32>
      %cst_15 = arith.constant 1.250000e-01 : f32
      %22 = vector.broadcast %cst_15 : f32 to vector<1x128xf32>
      %23 = arith.mulf %21, %22 : vector<1x128xf32>
      %c0_16 = arith.constant 0 : index
      %c0_17 = arith.constant 0 : index
      %24 = vector.load %arg4[%c0_16, %c0_17] : memref<1x128xf32, #tpu.memory_space<vmem>>, vector<1x128xf32>
      %cst_18 = arith.constant 9.99999974E-6 : f32
      %25 = vector.broadcast %cst_18 : f32 to vector<1x128xf32>
      %26 = arith.addf %23, %25 : vector<1x128xf32>
      %27 = math.rsqrt %26 : vector<1x128xf32>
      %28 = arith.mulf %24, %27 : vector<1x128xf32>
      %29 = vector.broadcast %28 : vector<1x128xf32> to vector<8x128xf32>
      %30 = arith.mulf %18, %29 : vector<8x128xf32>
      %c0_19 = arith.constant 0 : index
      %c0_20 = arith.constant 0 : index
      %31 = vector.load %arg5[%c0_19, %c0_20] : memref<1x128xf32, #tpu.memory_space<vmem>>, vector<1x128xf32>
      %32 = vector.broadcast %31 : vector<1x128xf32> to vector<8x128xf32>
      %33 = arith.addf %30, %32 : vector<8x128xf32>
      %cst_21 = arith.constant 0.000000e+00 : f32
      %34 = vector.broadcast %cst_21 : f32 to vector<8x128xf32>
      %35 = arith.maximumf %33, %34 : vector<8x128xf32>
      %c0_22 = arith.constant 0 : index
      %c0_23 = arith.constant 0 : index
      %36 = vector.load %arg6[%c0_22, %c0_23] : memref<8x128xf32, #tpu.memory_space<vmem>>, vector<8x128xf32>
      tpu.vector_store %arg6[%c0_22, %c0_23], %35 {strides = array<i32>} : memref<8x128xf32, #tpu.memory_space<vmem>>, vector<8x128xf32>,
    } else {
    }
    return
  }
  func.func @transform_0(%arg0: i32, %arg1: i32) -> (i32, i32) {
    %c0_i32 = arith.constant 0 : i32
    %c0_i32_0 = arith.constant 0 : i32
    return %c0_i32, %arg1 : i32, i32
  }
  func.func @transform_1(%arg0: i32, %arg1: i32) -> (i32, i32) {
    %c0_i32 = arith.constant 0 : i32
    return %arg1, %arg0 : i32, i32
  }
  func.func @transform_2(%arg0: i32, %arg1: i32) -> (i32, i32) {
    %c0_i32 = arith.constant 0 : i32
    %c0_i32_0 = arith.constant 0 : i32
    return %c0_i32, %arg0 : i32, i32
  }
  func.func @transform_3(%arg0: i32, %arg1: i32) -> (i32, i32) {
    %c0_i32 = arith.constant 0 : i32
    %c0_i32_0 = arith.constant 0 : i32
    return %c0_i32, %arg0 : i32, i32
  }
  func.func @transform_4(%arg0: i32, %arg1: i32) -> (i32, i32) {
    %c0_i32 = arith.constant 0 : i32
    %c0_i32_0 = arith.constant 0 : i32
    return %c0_i32, %arg0 : i32, i32
  }
}

</mosaic_0001>

<bundles_post_ra>
// kernel: tpu_custom_call.1
= control target key start
LH: loop header
LB: loop body
LE: loop exit
PB: predicated region body
PF: predicated region fallthrough
CT: control target
= control target key end

     0   :  { %9 = vsyncpa [#allocation3], 0  ;;  %s310_s0 = inlined_call_operand.hbm [shape: bf16[8,32], index: 0, kind: input, shape index: {}]   ;;  %s311_s1 = inlined_call_operand.hbm [shape: bf16[32,128], index: 1, kind: input, shape index: {}]   ;;  %s312_s2 = inlined_call_operand.vmem [shape: f32[1,128], index: 2, kind: input, shape index: {}]   ;;  %s313_s3 = inlined_call_operand.vmem [shape: f32[1,128], index: 3, kind: input, shape index: {}]   ;;  %s314_s4 = inlined_call_operand.hbm [shape: f32[8,128], index: 4, kind: output, shape index: {}]  }
   0x1   :  { %10 = vsyncpa [#allocation6], 0 }
   0x2   :  { %11 = vsyncpa [#allocation4], 0  ;;  %s263_s15 = smov [#allocation2]   ;;  %s264_s17 = smov [#allocation5]  }
   0x3   :  { %s18_s16 = sshll.u32 %s263_s15, 4  ;;  %s27_s18 = sshll.u32 %s264_s17, 4  ;;  %s19_s16 = int_to_ptr.vmem [resolvable:$true] %s18_s16  ;;  %s28_s18 = int_to_ptr.vmem [resolvable:$true] %s27_s18 }
   0x4   :  { %s205_s19 = scalar_lea.vmem %s19_s16, 64  ;;  %p210_p1 = scmp.lt.s32.totalorder %s19_s16, %s19_s16 }
   0x5   :  { %p206_p0 = scmp.ne.s32.totalorder %s19_s16, %s205_s19  ;;  %p211_p2 = scmp.lt.s32.totalorder %s205_s19, %s205_s19 }
   0x7   :  { %p212_p3 = por %p211_p2, %p210_p1 }
   0x9   :  { %p213_p4 = pnand %p212_p3, %p206_p0 }
   0xb   :  { %216 = shalt.err (!%p213_p4)
}
   0xc   :  { %21 = dma.hbm_to_vmem [thread:$0]  %s310_s0, 64, %s19_s16, [#allocation3]  }
   0xd   :  { %s225_s22 = scalar_lea.vmem %s28_s18, 256  ;;  %p230_p6 = scmp.lt.s32.totalorder %s28_s18, %s28_s18 }
   0xe   :  { %p226_p5 = scmp.ne.s32.totalorder %s28_s18, %s225_s22  ;;  %p231_p7 = scmp.lt.s32.totalorder %s225_s22, %s225_s22 }
  0x10   :  { %p232_p8 = por %p231_p7, %p230_p6 }
  0x12   :  { %p233_p9 = pnand %p232_p8, %p226_p5 }
  0x14   :  { %236 = shalt.err (!%p233_p9)
}
  0x15   :  { %s265_s23 = smov 64   ;;  %s266_s24 = smov 4  }
  0x16   :  { %33 = dma.hbm_to_vmem [thread:$0]  %s311_s1, 256, %s28_s18, [#allocation6], %s265_s23, %s265_s23, %s266_s24  }
  0x17   :  { %257 = dma.done.wait [#allocation3], 64  }
  0x18   :  { %258 = vsyncadd [#allocation3], 4294967232 }
  0x19   :  { %259 = dma.done.wait [#allocation6], 256  }
  0x1a   :  { %260 = vsyncadd [#allocation6], 4294967040  ;;  %v267_v0 = vmov 0.0   ;;  %vm268_vm0 = vmmov 0   ;;  %v193_v1 = vld [vmem:[#allocation5 + $0x8] sm:$0xff]   ;;  %v194_v2 = vld [vmem:[#allocation5] sm:$0xff]   ;;  %v139_v25 = vlaneseq }
  0x1b   :  { %178 = vmatprep.subr.bf16.mxu0 %v267_v0  ;;  %182 = vmatprep.mubr.msk.bf16.mxu0 %vm268_vm0, %v267_v0  ;;  %v51_v3 = vld [vmem:[#allocation2] sm:$0xf]  ;;  %vm68_vm1 = vcmask 261120   ;;  %s269_s29 = smov [#allocation7]  }
  0x1c   :  { %179 = vmatpush3.bf16.msra.mxu0 %v193_v1  ;;  %v140_v26 = vshrl.u32 %v139_v25, 7  ;;  %v134_v27 = vld [vmem:[%s312_s2] sm:$0x1]  ;;  %s161_s30 = sshll.u32 %s269_s29, 4  ;;  %s162_s30 = int_to_ptr.vmem [resolvable:$true] %s161_s30 }
  0x1d   :  { %180 = vmatprep.subr.bf16.mxu0 %v267_v0  ;;  %v174_v32 = vld [vmem:[%s313_s3] ss:$0 sm:$0xff]  ;;  %s237_s5 = scalar_lea.vmem %s162_s30, 128  ;;  %p242_p11 = scmp.lt.s32.totalorder %s162_s30, %s162_s30 }
  0x1e   :  { %v141_v28 = vsub.s32 0, %v140_v26  ;;  %p238_p10 = scmp.ne.s32.totalorder %s162_s30, %s237_s5  ;;  %p243_p12 = scmp.lt.s32.totalorder %s237_s5, %s237_s5 }
  0x20   :  { %181 = vmatpush3.bf16.msra.mxu0 %v194_v2  ;;  %p244_p13 = por %p243_p12, %p242_p11 }
  0x22   :  { %p245_p0 = pnand %p244_p13, %p238_p10 }
  0x23   :  { %183 = vmatmul.mubr.msk.bf16.vlgmr.msra.gmra.mxu0 %vm68_vm1, %v51_v3 }
  0xe3   :  { %v106_v4 = vpop.f32.mrf.mxu0 }
  0xe4   :  { %v118_v6 = vrot.slane %v106_v4, 4 }
  0xe5   :  { %v184_v5 = vpop.f32.mrf.mxu0 }
  0xe6   :  { %v119_v8 = vadd.f32 %v118_v6, %v106_v4 }
  0xe7   :  { %v109_v7 = vpop.f32.mrf.mxu0 }
  0xe8   :  { %v120_v10 = vrot.slane %v119_v8, 2 }
  0xe9   :  { %v185_v9 = vpop.f32.mrf.mxu0 }
  0xea   :  { %v121_v11 = vadd.f32 %v120_v10, %v119_v8 }
  0xec   :  { %v122_v12 = vrot.slane %v121_v11, 1 }
  0xee   :  { %v123_v13 = vadd.f32 %v122_v12, %v121_v11 }
  0xf0   :  { %v124_v14 = vmul.f32 0.125, %v123_v13 }
  0xf2   :  { %v125_v15 = vsub.f32 %v106_v4, %v124_v14 }
  0xf4   :  { %v126_v16 = vmul.f32 %v125_v15, %v125_v15 }
  0xf6   :  { %v127_v17 = vrot.slane %v126_v16, 4 }
  0xf8   :  { %v128_v18 = vadd.f32 %v127_v17, %v126_v16 }
  0xfa   :  { %v129_v19 = vrot.slane %v128_v18, 2 }
  0xfc   :  { %v130_v20 = vadd.f32 %v129_v19, %v128_v18 }
  0xfe   :  { %v131_v21 = vrot.slane %v130_v20, 1 }
 0x100   :  { %v132_v22 = vadd.f32 %v131_v21, %v130_v20 }
 0x102   :  { %v133_v23 = vmul.f32 0.125, %v132_v22 }
 0x104   :  { %v135_v24 = vadd.f32 1e-05, %v133_v23 }
 0x106   :  { %195 = vrsqrt.f32 %v135_v24 }
 0x113   :  { %v196_v29 = vpop.eup %195 }
 0x114   :  { %v137_v30 = vmul.f32 %v196_v29, %v134_v27 }
 0x116   :  { %v142_v31 = vrot.slane %v137_v30, %v141_v28 }
 0x118   :  { %v144_v33 = vmul.f32 %v142_v31, %v125_v15 }
 0x11a   :  { %v152_v34 = vadd.f32 %v174_v32, %v144_v33 }
 0x11c   :  { %v153_v35 = vmax.f32 %v152_v34, 0.0 }
 0x11e   :  { %154 = vst [vmem:[#allocation7] sm:$0xff] %v153_v35 }
 0x11f   :  { %248 = shalt.err (!%p245_p0)
}
 0x120   :  { %164 = dma.vmem_to_hbm [thread:$0]  %s162_s30, 128, %s314_s4, [#allocation4]  }
 0x121   :  { %261 = dma.done.wait [#allocation4], 128  }
 0x122   :  { %262 = vsyncadd [#allocation4], 4294967168 }
 0x123   :  { %168 = vsyncpa [#allocation3], 1 }
 0x124   :  { %169 = vsyncpa [#allocation6], 1 }
 0x125   :  { %170 = vsyncpa [#allocation4], 1 }

</bundles_post_ra>
